<compile_context>
chip_gen: v7x
topology: tpu7x:2x2x1
jax: 0.10.0
libtpu: 0.0.40
codegen_flags: <defaults>
</compile_context>

<pallas_src>
import jax
import jax.numpy as jnp
from jax.experimental import pallas as pl
from jax.experimental.pallas import tpu as pltpu


def _cdiv(a, b):
    return -(-a // b)


def _round_up(a, b):
    return _cdiv(a, b) * b


def dal_mlp_kernel(x_ref, w_ref, b_ref, o_ref):
    """One (tm, tn) output tile of relu(x @ W_t + b).

    x_ref: (tm, E)  f32   (cast to matmul dtype in-kernel: no extra HBM pass)
    w_ref: (E, tn)  bf16  (pre-transposed / pre-padded at parameter-load time)
    b_ref: (1, tn)  f32
    o_ref: (tm, tn) f32
    """
    x = x_ref[...].astype(w_ref.dtype)
    y = jnp.dot(x, w_ref[...], preferred_element_type=jnp.float32)
    # Bias-add + ReLU in f32 on the VPU; single broadcast-add per tile.
    o_ref[...] = jnp.maximum(y + b_ref[...], 0.0).astype(o_ref.dtype)


def prepare_dal_mlp_params(weight, bias, *, compute_dtype=jnp.bfloat16):
    """One-time parameter prep (do NOT call per forward).

    weight: (num_labels, emb_dim) f32   -- native PyTorch nn.Linear layout
    bias:   (num_labels,)         f32
    Returns dict with the transposed / padded / cast weight, padded bias row,
    and the label-tile width tn.
    """
    num_labels, emb_dim = weight.shape
    # 256-wide label tiles match the 2x256x256 MXU on v6e/v7x; 128 is enough
    # (and exact) for small heads and v5e's 4x128x128 MXU.
    tn = 256 if num_labels > 128 else 128
    l_pad = _round_up(num_labels, tn)

    w_t = weight.T  # (E, L): plain (M,K)x(K,N) contraction, no in-kernel relayout
    bias_p = bias
    if l_pad != num_labels:
        w_t = jnp.pad(w_t, ((0, 0), (0, l_pad - num_labels)))
        bias_p = jnp.pad(bias, (0, l_pad - num_labels))
    # NOTE: padding emb_dim (K) to 128 here would also require padding x every
    # call; skipped because this layer is bandwidth-bound, not MXU-bound.
    return {
        "w_t": w_t.astype(compute_dtype),                       # (E, L_pad)
        "bias": bias_p.astype(jnp.float32).reshape(1, l_pad),   # (1, L_pad)
        "num_labels": int(num_labels),
        "tn": int(tn),
    }


def dal_mlp_forward(x, params, *, vmem_budget_bytes=32 * 1024 * 1024,
                    max_block_rows=512, slice_output=True):
    """Pallas equivalent of DALMLP.forward: relu(fc1(x)).

    x: (batch, emb_dim) f32, params from prepare_dal_mlp_params.
    Returns (batch, num_labels) f32.  Set slice_output=False to get the padded
    (b_pad, l_pad) slab (saves one HBM pass if downstream can consume it).
    """
    w_t = params["w_t"]
    bias2 = params["bias"]
    num_labels = params["num_labels"]
    tn = params["tn"]

    batch, emb_dim = x.shape
    e_w, l_pad = w_t.shape
    assert e_w == emb_dim, "x emb_dim does not match prepared weight"
    n_l = l_pad // tn

    # --- VMEM-budget-driven row tile ----------------------------------------
    # W + bias tiles are single-buffered; x-in and out tiles are double-buffered.
    w_tile_bytes = emb_dim * tn * w_t.dtype.itemsize
    bias_tile_bytes = tn * 4
    per_row_bytes = 2 * 4 * emb_dim + 2 * 4 * tn
    tm_max = (vmem_budget_bytes - w_tile_bytes - bias_tile_bytes) // per_row_bytes
    tm_max = max(16, min(max_block_rows, (tm_max // 16) * 16))
    # Shrink tm so x row-padding is only a handful of rows (avoid copying all of x).
    n_bt = _cdiv(batch, tm_max)
    tm = _round_up(_cdiv(batch, n_bt), 16)
    b_pad = _round_up(batch, tm)

    x_p = x if b_pad == batch else jnp.pad(x, ((0, b_pad - batch), (0, 0)))

    # Labels outer, batch inner: each W tile is reused across all batch tiles.
    grid = (n_l, b_pad // tm)

    cost = pl.CostEstimate(
        flops=2 * b_pad * emb_dim * l_pad,
        transcendentals=0,
        bytes_accessed=(4 * b_pad * emb_dim
                        + w_t.dtype.itemsize * emb_dim * l_pad
                        + 4 * l_pad
                        + 4 * b_pad * l_pad),
    )

    def build(single_buffer_params):
        pm = {"pipeline_mode": pl.Buffered(1)} if single_buffer_params else {}
        return pl.pallas_call(
            dal_mlp_kernel,
            out_shape=jax.ShapeDtypeStruct((b_pad, l_pad), jnp.float32),
            grid_spec=pltpu.PrefetchScalarGridSpec(
                num_scalar_prefetch=0,
                grid=grid,
                in_specs=[
                    # x: one row tile per inner grid step.
                    pl.BlockSpec((tm, emb_dim), lambda l, b: (b, 0)),
                    # W tile: constant over the inner batch loop -> VMEM-resident.
                    pl.BlockSpec((emb_dim, tn), lambda l, b: (0, l), **pm),
                    # bias tile: same.
                    pl.BlockSpec((1, tn), lambda l, b: (0, l), **pm),
                ],
                out_specs=pl.BlockSpec((tm, tn), lambda l, b: (b, l)),
            ),
            compiler_params=pltpu.CompilerParams(
                dimension_semantics=("parallel", "parallel"),
                vmem_limit_bytes=48 * 1024 * 1024,
            ),
            cost_estimate=cost,
        )

    try:
        out = build(True)(x_p, w_t, bias2)
    except Exception:
        # pl.Buffered(1) / pipeline_mode not supported on this jax version:
        # fall back to default double-buffering (correct, slightly more VMEM).
        out = build(False)(x_p, w_t, bias2)

    if slice_output:
        return out[:batch, :num_labels]
    return out


if __name__ == "__main__":
    # Small shapes consistent with the module: batch=8, emb_dim=32, num_labels=16.
    batch, emb_dim, num_labels = 8, 32, 16

    key = jax.random.PRNGKey(0)
    kx, kw, kb = jax.random.split(key, 3)

    x = jax.random.normal(kx, (batch, emb_dim), dtype=jnp.float32)

    # Deterministic init mimicking nn.Linear default: U(-1/sqrt(fan_in), +1/sqrt(fan_in))
    bound = 1.0 / (emb_dim ** 0.5)
    weight = jax.random.uniform(kw, (num_labels, emb_dim), jnp.float32, -bound, bound)
    bias = jax.random.uniform(kb, (num_labels,), jnp.float32, -bound, bound)

    params = prepare_dal_mlp_params(weight, bias)   # one-time, not per call
    out = dal_mlp_forward(x, params)
    out = jax.block_until_ready(out)

    # Reference 1: same numerics (bf16 inputs, f32 accumulation) in plain JAX.
    ref_bf16 = jnp.maximum(
        jnp.dot(x.astype(jnp.bfloat16), weight.T.astype(jnp.bfloat16),
                preferred_element_type=jnp.float32) + bias, 0.0)
    # Reference 2: full-f32 PyTorch semantics (looser tolerance for bf16 MXU).
    ref_f32 = jnp.maximum(x @ weight.T + bias, 0.0)

    assert out.shape == (batch, num_labels)
    assert out.dtype == jnp.float32
    assert jnp.allclose(out, ref_bf16, atol=1e-3, rtol=1e-3), "mismatch vs bf16 reference"
    assert jnp.allclose(out, ref_f32, atol=5e-2, rtol=5e-2), "mismatch vs f32 reference"

    print("KERNEL_OK")
</pallas_src>

<mosaic_0001>
module attributes {stable_mosaic.version = 11 : i64} {
  func.func @dal_mlp_kernel(%arg0: i32, %arg1: i32, %arg2: memref<16x32xf32, #tpu.memory_space<vmem>>, %arg3: memref<32x128xbf16, #tpu.memory_space<vmem>>, %arg4: memref<1x128xf32, #tpu.memory_space<vmem>>, %arg5: memref<16x128xf32, #tpu.memory_space<vmem>>) attributes {dimension_semantics = [#tpu.dimension_semantics<parallel>, #tpu.dimension_semantics<parallel>], iteration_bounds = array<i64: 1, 1>, scalar_prefetch = 0 : i64, scratch_operands = 0 : i64, tpu.core_type = #tpu.core_type<tc>, window_params = [{transform_indices = @transform_0, window_bounds = array<i64: 16, 32>}, {pipeline_mode = #tpu.pipeline_mode<synchronous>, transform_indices = @transform_1, window_bounds = array<i64: 32, 128>}, {pipeline_mode = #tpu.pipeline_mode<synchronous>, transform_indices = @transform_2, window_bounds = array<i64: 1, 128>}, {transform_indices = @transform_3, window_bounds = array<i64: 16, 128>}]} {
    %c0 = arith.constant 0 : index
    %c0_0 = arith.constant 0 : index
    %0 = vector.load %arg2[%c0, %c0_0] : memref<16x32xf32, #tpu.memory_space<vmem>>, vector<16x32xf32>
    %1 = arith.truncf %0 : vector<16x32xf32> to vector<16x32xbf16>
    %c0_1 = arith.constant 0 : index
    %c0_2 = arith.constant 0 : index
    %2 = vector.load %arg3[%c0_1, %c0_2] : memref<32x128xbf16, #tpu.memory_space<vmem>>, vector<32x128xbf16>
    %cst = arith.constant dense<0.000000e+00> : vector<16x128xf32>
    %3 = tpu.matmul %1, %2, %cst {dimension_numbers = #tpu.dot_dimension_numbers<[1], [0], [0], [1], [0, 0, 1, 1], [], []>} : vector<16x32xbf16>, vector<32x128xbf16>, vector<16x128xf32> -> vector<16x128xf32>
    %c0_3 = arith.constant 0 : index
    %c0_4 = arith.constant 0 : index
    %4 = vector.load %arg4[%c0_3, %c0_4] : memref<1x128xf32, #tpu.memory_space<vmem>>, vector<1x128xf32>
    %5 = vector.broadcast %4 : vector<1x128xf32> to vector<16x128xf32>
    %6 = arith.addf %3, %5 : vector<16x128xf32>
    %cst_5 = arith.constant 0.000000e+00 : f32
    %7 = vector.broadcast %cst_5 : f32 to vector<16x128xf32>
    %8 = arith.maximumf %6, %7 : vector<16x128xf32>
    %c0_6 = arith.constant 0 : index
    %c0_7 = arith.constant 0 : index
    %9 = vector.load %arg5[%c0_6, %c0_7] : memref<16x128xf32, #tpu.memory_space<vmem>>, vector<16x128xf32>
    tpu.vector_store %arg5[%c0_6, %c0_7], %8 {strides = array<i32>} : memref<16x128xf32, #tpu.memory_space<vmem>>, vector<16x128xf32>,
    return
  }
  func.func @transform_0(%arg0: i32, %arg1: i32) -> (i32, i32) {
    %c0_i32 = arith.constant 0 : i32
    %c0_i32_0 = arith.constant 0 : i32
    return %arg1, %c0_i32 : i32, i32
  }
  func.func @transform_1(%arg0: i32, %arg1: i32) -> (i32, i32) {
    %c0_i32 = arith.constant 0 : i32
    %c0_i32_0 = arith.constant 0 : i32
    return %c0_i32, %arg0 : i32, i32
  }
  func.func @transform_2(%arg0: i32, %arg1: i32) -> (i32, i32) {
    %c0_i32 = arith.constant 0 : i32
    %c0_i32_0 = arith.constant 0 : i32
    return %c0_i32, %arg0 : i32, i32
  }
  func.func @transform_3(%arg0: i32, %arg1: i32) -> (i32, i32) {
    %c0_i32 = arith.constant 0 : i32
    return %arg1, %arg0 : i32, i32
  }
}

module attributes {stable_mosaic.version = 11 : i64} {
  func.func @dal_mlp_kernel(%arg0: i32, %arg1: i32, %arg2: memref<16x32xf32, #tpu.memory_space<vmem>>, %arg3: memref<32x128xbf16, #tpu.memory_space<vmem>>, %arg4: memref<1x128xf32, #tpu.memory_space<vmem>>, %arg5: memref<16x128xf32, #tpu.memory_space<vmem>>) attributes {dimension_semantics = [#tpu.dimension_semantics<parallel>, #tpu.dimension_semantics<parallel>], iteration_bounds = array<i64: 1, 1>, scalar_prefetch = 0 : i64, scratch_operands = 0 : i64, tpu.core_type = #tpu.core_type<tc>, window_params = [{transform_indices = @transform_0, window_bounds = array<i64: 16, 32>}, {transform_indices = @transform_1, window_bounds = array<i64: 32, 128>}, {transform_indices = @transform_2, window_bounds = array<i64: 1, 128>}, {transform_indices = @transform_3, window_bounds = array<i64: 16, 128>}]} {
    %c0 = arith.constant 0 : index
    %c0_0 = arith.constant 0 : index
    %0 = vector.load %arg2[%c0, %c0_0] : memref<16x32xf32, #tpu.memory_space<vmem>>, vector<16x32xf32>
    %1 = arith.truncf %0 : vector<16x32xf32> to vector<16x32xbf16>
    %c0_1 = arith.constant 0 : index
    %c0_2 = arith.constant 0 : index
    %2 = vector.load %arg3[%c0_1, %c0_2] : memref<32x128xbf16, #tpu.memory_space<vmem>>, vector<32x128xbf16>
    %cst = arith.constant dense<0.000000e+00> : vector<16x128xf32>
    %3 = tpu.matmul %1, %2, %cst {dimension_numbers = #tpu.dot_dimension_numbers<[1], [0], [0], [1], [0, 0, 1, 1], [], []>} : vector<16x32xbf16>, vector<32x128xbf16>, vector<16x128xf32> -> vector<16x128xf32>
    %c0_3 = arith.constant 0 : index
    %c0_4 = arith.constant 0 : index
    %4 = vector.load %arg4[%c0_3, %c0_4] : memref<1x128xf32, #tpu.memory_space<vmem>>, vector<1x128xf32>
    %5 = vector.broadcast %4 : vector<1x128xf32> to vector<16x128xf32>
    %6 = arith.addf %3, %5 : vector<16x128xf32>
    %cst_5 = arith.constant 0.000000e+00 : f32
    %7 = vector.broadcast %cst_5 : f32 to vector<16x128xf32>
    %8 = arith.maximumf %6, %7 : vector<16x128xf32>
    %c0_6 = arith.constant 0 : index
    %c0_7 = arith.constant 0 : index
    %9 = vector.load %arg5[%c0_6, %c0_7] : memref<16x128xf32, #tpu.memory_space<vmem>>, vector<16x128xf32>
    tpu.vector_store %arg5[%c0_6, %c0_7], %8 {strides = array<i32>} : memref<16x128xf32, #tpu.memory_space<vmem>>, vector<16x128xf32>,
    return
  }
  func.func @transform_0(%arg0: i32, %arg1: i32) -> (i32, i32) {
    %c0_i32 = arith.constant 0 : i32
    %c0_i32_0 = arith.constant 0 : i32
    return %arg1, %c0_i32 : i32, i32
  }
  func.func @transform_1(%arg0: i32, %arg1: i32) -> (i32, i32) {
    %c0_i32 = arith.constant 0 : i32
    %c0_i32_0 = arith.constant 0 : i32
    return %c0_i32, %arg0 : i32, i32
  }
  func.func @transform_2(%arg0: i32, %arg1: i32) -> (i32, i32) {
    %c0_i32 = arith.constant 0 : i32
    %c0_i32_0 = arith.constant 0 : i32
    return %c0_i32, %arg0 : i32, i32
  }
  func.func @transform_3(%arg0: i32, %arg1: i32) -> (i32, i32) {
    %c0_i32 = arith.constant 0 : i32
    return %arg1, %arg0 : i32, i32
  }
}

</mosaic_0001>

<bundles_post_ra>
// kernel: tpu_custom_call.1
= control target key start
LH: loop header
LB: loop body
LE: loop exit
PB: predicated region body
PF: predicated region fallthrough
CT: control target
= control target key end

     0   :  { %8 = vsyncpa [#allocation3], 0  ;;  %s309_s0 = inlined_call_operand.hbm [shape: f32[16,32], index: 0, kind: input, shape index: {}]   ;;  %s310_s1 = inlined_call_operand.hbm [shape: bf16[32,128], index: 1, kind: input, shape index: {}]   ;;  %s311_s2 = inlined_call_operand.vmem [shape: f32[1,128], index: 2, kind: input, shape index: {}]   ;;  %s312_s3 = inlined_call_operand.hbm [shape: f32[16,128], index: 3, kind: output, shape index: {}]  }
   0x1   :  { %9 = vsyncpa [#allocation6], 0 }
   0x2   :  { %10 = vsyncpa [#allocation4], 0  ;;  %s235_s12 = smov [#allocation2]   ;;  %s163_s16 = scalar_lea.hbm %s309_s0, 256 }
   0x3   :  { %s16_s13 = sshll.u32 %s235_s12, 4  ;;  %p164_p0 = scmp.ne.s32.totalorder %s309_s0, %s163_s16  ;;  %s17_s13 = int_to_ptr.vmem [resolvable:$true] %s16_s13 }
   0x4   :  { %p167_p1 = scmp.lt.u32.totalorder %s163_s16, %s309_s0 }
   0x6   :  { %p169_p2 = pnand %p167_p1, %p164_p0 }
   0x8   :  { %172 = shalt.err (!%p169_p2)
}
   0x9   :  { %s173_s21 = scalar_lea.vmem %s17_s13, 256  ;;  %p178_p4 = scmp.lt.s32.totalorder %s17_s13, %s17_s13 }
   0xa   :  { %p174_p3 = scmp.ne.s32.totalorder %s17_s13, %s173_s21  ;;  %p179_p5 = scmp.lt.s32.totalorder %s173_s21, %s173_s21 }
   0xc   :  { %p180_p6 = por %p179_p5, %p178_p4 }
   0xe   :  { %p181_p7 = pnand %p180_p6, %p174_p3 }
  0x10   :  { %184 = shalt.err (!%p181_p7)
}
  0x11   :  { %s236_s22 = smov 128   ;;  %s237_s23 = smov 8  }
  0x12   :  { %22 = dma.hbm_to_vmem [thread:$0]  %s309_s0, 256, %s17_s13, [#allocation3], %s236_s22, %s236_s22, %s237_s23  }
  0x13   :  { %s238_s26 = smov [#allocation5]   ;;  %s185_s30 = scalar_lea.hbm %s310_s1, 256 }
  0x14   :  { %s28_s27 = sshll.u32 %s238_s26, 4  ;;  %p186_p8 = scmp.ne.s32.totalorder %s310_s1, %s185_s30  ;;  %s29_s27 = int_to_ptr.vmem [resolvable:$true] %s28_s27 }
  0x15   :  { %p189_p9 = scmp.lt.u32.totalorder %s185_s30, %s310_s1 }
  0x17   :  { %p191_p10 = pnand %p189_p9, %p186_p8 }
  0x19   :  { %194 = shalt.err (!%p191_p10)
}
  0x1a   :  { %s195_s8 = scalar_lea.vmem %s29_s27, 256  ;;  %p200_p12 = scmp.lt.s32.totalorder %s29_s27, %s29_s27 }
  0x1b   :  { %p196_p11 = scmp.ne.s32.totalorder %s29_s27, %s195_s8  ;;  %p201_p13 = scmp.lt.s32.totalorder %s195_s8, %s195_s8 }
  0x1d   :  { %p202_p0 = por %p201_p13, %p200_p12 }
  0x1f   :  { %p203_p1 = pnand %p202_p0, %p196_p11 }
  0x21   :  { %206 = shalt.err (!%p203_p1)
}
  0x22   :  { %s239_s0 = smov 64   ;;  %s240_s9 = smov 4  }
  0x23   :  { %34 = dma.hbm_to_vmem [thread:$0]  %s310_s1, 256, %s29_s27, [#allocation6], %s239_s0, %s239_s0, %s240_s9  }
  0x24   :  { %229 = dma.done.wait [#allocation3], 256  }
  0x25   :  { %230 = vsyncadd [#allocation3], 4294967040 }
  0x26   :  { %231 = dma.done.wait [#allocation6], 256  }
  0x27   :  { %232 = vsyncadd [#allocation6], 4294967040  ;;  %v241_v0 = vmov 0.0   ;;  %vm242_vm0 = vmmov 0   ;;  %v161_v1 = vld [vmem:[#allocation5] sm:$0xff]   ;;  %v162_v2 = vld [vmem:[#allocation5 + $0x8] sm:$0xff]  }
  0x28   :  { %144 = vmatprep.subr.bf16.mxu0 %v241_v0  ;;  %148 = vmatprep.mubr.msk.bf16.mxu0 %vm242_vm0, %v241_v0  ;;  %v44_v3 = vld [vmem:[#allocation2] sm:$0xff]  ;;  %v45_v4 = vld [vmem:[#allocation2 + $0x8] sm:$0xff]  ;;  %vm70_vm1 = vcmask 261120   ;;  %s243_s13 = smov [#allocation7]  }
  0x29   :  { %145 = vmatpush3.bf16.msra.mxu0 %v161_v1  ;;  %v46_v5 = vpack.c.bf16 %v45_v4, %v44_v3  ;;  %v137_v6 = vld [vmem:[%s311_s2] ss:$0 sm:$0xff]  ;;  %s124_s14 = sshll.u32 %s243_s13, 4  ;;  %s125_s14 = int_to_ptr.vmem [resolvable:$true] %s124_s14 }
  0x2a   :  { %146 = vmatprep.subr.bf16.mxu0 %v241_v0  ;;  %s207_s15 = scalar_lea.vmem %s125_s14, 256  ;;  %p212_p3 = scmp.lt.s32.totalorder %s125_s14, %s125_s14 }
  0x2b   :  { %p208_p2 = scmp.ne.s32.totalorder %s125_s14, %s207_s15  ;;  %p213_p4 = scmp.lt.s32.totalorder %s207_s15, %s207_s15 }
  0x2d   :  { %147 = vmatpush3.bf16.msra.mxu0 %v162_v2  ;;  %p214_p5 = por %p213_p4, %p212_p3 }
  0x2f   :  { %p215_p6 = pnand %p214_p5, %p208_p2 }
  0x30   :  { %149 = vmatmul.mubr.msk.bf16.vlgmr.msra.gmra.mrb[0].mxu0 %vm70_vm1, %v46_v5 }
 0x103   :  { %v108_v7 = vpop.f32.mrb[0].mxu0 }
 0x104   :  { %v109_v8 = vadd.f32 %v137_v6, %v108_v7  ;;  %v150_v9 = vpop.f32.mrb[1].mxu0 }
 0x105   :  { %v111_v10 = vpop.f32.mrb[2].mxu0 }
 0x106   :  { %v115_v11 = vmax.f32 %v109_v8, 0.0  ;;  %v112_v12 = vadd.f32 %v137_v6, %v111_v10  ;;  %v151_v13 = vpop.f32.mrb[3].mxu0 }
 0x108   :  { %117 = vst [vmem:[#allocation7] sm:$0xff] %v115_v11  ;;  %v116_v14 = vmax.f32 %v112_v12, 0.0 }
 0x10a   :  { %118 = vst [vmem:[#allocation7 + $0x8] sm:$0xff] %v116_v14 }
 0x10b   :  { %218 = shalt.err (!%p215_p6)
}
 0x10c   :  { %s219_s17 = scalar_lea.hbm %s312_s3, 256 }
 0x10d   :  { %p220_p7 = scmp.ne.s32.totalorder %s312_s3, %s219_s17  ;;  %p223_p8 = scmp.lt.u32.totalorder %s219_s17, %s312_s3 }
 0x10f   :  { %p225_p9 = pnand %p223_p8, %p220_p7 }
 0x111   :  { %228 = shalt.err (!%p225_p9)
}
 0x112   :  { %130 = dma.vmem_to_hbm [thread:$0]  %s125_s14, 256, %s312_s3, [#allocation4], %s236_s22, %s236_s22, %s237_s23  }
 0x113   :  { %233 = dma.done.wait [#allocation4], 256  }
 0x114   :  { %234 = vsyncadd [#allocation4], 4294967040 }
 0x115   :  { %134 = vsyncpa [#allocation3], 1 }
 0x116   :  { %135 = vsyncpa [#allocation6], 1 }
 0x117   :  { %136 = vsyncpa [#allocation4], 1 }

// kernel: tpu_custom_call.1
= control target key start
LH: loop header
LB: loop body
LE: loop exit
PB: predicated region body
PF: predicated region fallthrough
CT: control target
= control target key end

     0   :  { %8 = vsyncpa [#allocation3], 0  ;;  %s309_s0 = inlined_call_operand.hbm [shape: f32[16,32], index: 0, kind: input, shape index: {}]   ;;  %s310_s1 = inlined_call_operand.hbm [shape: bf16[32,128], index: 1, kind: input, shape index: {}]   ;;  %s311_s2 = inlined_call_operand.vmem [shape: f32[1,128], index: 2, kind: input, shape index: {}]   ;;  %s312_s3 = inlined_call_operand.hbm [shape: f32[16,128], index: 3, kind: output, shape index: {}]  }
   0x1   :  { %9 = vsyncpa [#allocation6], 0 }
   0x2   :  { %10 = vsyncpa [#allocation4], 0  ;;  %s235_s12 = smov [#allocation2]   ;;  %s163_s16 = scalar_lea.hbm %s309_s0, 256 }
   0x3   :  { %s16_s13 = sshll.u32 %s235_s12, 4  ;;  %p164_p0 = scmp.ne.s32.totalorder %s309_s0, %s163_s16  ;;  %s17_s13 = int_to_ptr.vmem [resolvable:$true] %s16_s13 }
   0x4   :  { %p167_p1 = scmp.lt.u32.totalorder %s163_s16, %s309_s0 }
   0x6   :  { %p169_p2 = pnand %p167_p1, %p164_p0 }
   0x8   :  { %172 = shalt.err (!%p169_p2)
}
   0x9   :  { %s173_s21 = scalar_lea.vmem %s17_s13, 256  ;;  %p178_p4 = scmp.lt.s32.totalorder %s17_s13, %s17_s13 }
   0xa   :  { %p174_p3 = scmp.ne.s32.totalorder %s17_s13, %s173_s21  ;;  %p179_p5 = scmp.lt.s32.totalorder %s173_s21, %s173_s21 }
   0xc   :  { %p180_p6 = por %p179_p5, %p178_p4 }
   0xe   :  { %p181_p7 = pnand %p180_p6, %p174_p3 }
  0x10   :  { %184 = shalt.err (!%p181_p7)
}
  0x11   :  { %s236_s22 = smov 128   ;;  %s237_s23 = smov 8  }
  0x12   :  { %22 = dma.hbm_to_vmem [thread:$0]  %s309_s0, 256, %s17_s13, [#allocation3], %s236_s22, %s236_s22, %s237_s23  }
  0x13   :  { %s238_s26 = smov [#allocation5]   ;;  %s185_s30 = scalar_lea.hbm %s310_s1, 256 }
  0x14   :  { %s28_s27 = sshll.u32 %s238_s26, 4  ;;  %p186_p8 = scmp.ne.s32.totalorder %s310_s1, %s185_s30  ;;  %s29_s27 = int_to_ptr.vmem [resolvable:$true] %s28_s27 }
  0x15   :  { %p189_p9 = scmp.lt.u32.totalorder %s185_s30, %s310_s1 }
  0x17   :  { %p191_p10 = pnand %p189_p9, %p186_p8 }
  0x19   :  { %194 = shalt.err (!%p191_p10)
}
  0x1a   :  { %s195_s8 = scalar_lea.vmem %s29_s27, 256  ;;  %p200_p12 = scmp.lt.s32.totalorder %s29_s27, %s29_s27 }
  0x1b   :  { %p196_p11 = scmp.ne.s32.totalorder %s29_s27, %s195_s8  ;;  %p201_p13 = scmp.lt.s32.totalorder %s195_s8, %s195_s8 }
  0x1d   :  { %p202_p0 = por %p201_p13, %p200_p12 }
  0x1f   :  { %p203_p1 = pnand %p202_p0, %p196_p11 }
  0x21   :  { %206 = shalt.err (!%p203_p1)
}
  0x22   :  { %s239_s0 = smov 64   ;;  %s240_s9 = smov 4  }
  0x23   :  { %34 = dma.hbm_to_vmem [thread:$0]  %s310_s1, 256, %s29_s27, [#allocation6], %s239_s0, %s239_s0, %s240_s9  }
  0x24   :  { %229 = dma.done.wait [#allocation3], 256  }
  0x25   :  { %230 = vsyncadd [#allocation3], 4294967040 }
  0x26   :  { %231 = dma.done.wait [#allocation6], 256  }
  0x27   :  { %232 = vsyncadd [#allocation6], 4294967040  ;;  %v241_v0 = vmov 0.0   ;;  %vm242_vm0 = vmmov 0   ;;  %v161_v1 = vld [vmem:[#allocation5] sm:$0xff]   ;;  %v162_v2 = vld [vmem:[#allocation5 + $0x8] sm:$0xff]  }
  0x28   :  { %144 = vmatprep.subr.bf16.mxu0 %v241_v0  ;;  %148 = vmatprep.mubr.msk.bf16.mxu0 %vm242_vm0, %v241_v0  ;;  %v44_v3 = vld [vmem:[#allocation2] sm:$0xff]  ;;  %v45_v4 = vld [vmem:[#allocation2 + $0x8] sm:$0xff]  ;;  %vm70_vm1 = vcmask 261120   ;;  %s243_s13 = smov [#allocation7]  }
  0x29   :  { %145 = vmatpush3.bf16.msra.mxu0 %v161_v1  ;;  %v46_v5 = vpack.c.bf16 %v45_v4, %v44_v3  ;;  %v137_v6 = vld [vmem:[%s311_s2] ss:$0 sm:$0xff]  ;;  %s124_s14 = sshll.u32 %s243_s13, 4  ;;  %s125_s14 = int_to_ptr.vmem [resolvable:$true] %s124_s14 }
  0x2a   :  { %146 = vmatprep.subr.bf16.mxu0 %v241_v0  ;;  %s207_s15 = scalar_lea.vmem %s125_s14, 256  ;;  %p212_p3 = scmp.lt.s32.totalorder %s125_s14, %s125_s14 }
  0x2b   :  { %p208_p2 = scmp.ne.s32.totalorder %s125_s14, %s207_s15  ;;  %p213_p4 = scmp.lt.s32.totalorder %s207_s15, %s207_s15 }
  0x2d   :  { %147 = vmatpush3.bf16.msra.mxu0 %v162_v2  ;;  %p214_p5 = por %p213_p4, %p212_p3 }
  0x2f   :  { %p215_p6 = pnand %p214_p5, %p208_p2 }
  0x30   :  { %149 = vmatmul.mubr.msk.bf16.vlgmr.msra.gmra.mrb[0].mxu0 %vm70_vm1, %v46_v5 }
 0x103   :  { %v108_v7 = vpop.f32.mrb[0].mxu0 }
 0x104   :  { %v109_v8 = vadd.f32 %v137_v6, %v108_v7  ;;  %v150_v9 = vpop.f32.mrb[1].mxu0 }
 0x105   :  { %v111_v10 = vpop.f32.mrb[2].mxu0 }
 0x106   :  { %v115_v11 = vmax.f32 %v109_v8, 0.0  ;;  %v112_v12 = vadd.f32 %v137_v6, %v111_v10  ;;  %v151_v13 = vpop.f32.mrb[3].mxu0 }
 0x108   :  { %117 = vst [vmem:[#allocation7] sm:$0xff] %v115_v11  ;;  %v116_v14 = vmax.f32 %v112_v12, 0.0 }
 0x10a   :  { %118 = vst [vmem:[#allocation7 + $0x8] sm:$0xff] %v116_v14 }
 0x10b   :  { %218 = shalt.err (!%p215_p6)
}
 0x10c   :  { %s219_s17 = scalar_lea.hbm %s312_s3, 256 }
 0x10d   :  { %p220_p7 = scmp.ne.s32.totalorder %s312_s3, %s219_s17  ;;  %p223_p8 = scmp.lt.u32.totalorder %s219_s17, %s312_s3 }
 0x10f   :  { %p225_p9 = pnand %p223_p8, %p220_p7 }
 0x111   :  { %228 = shalt.err (!%p225_p9)
}
 0x112   :  { %130 = dma.vmem_to_hbm [thread:$0]  %s125_s14, 256, %s312_s3, [#allocation4], %s236_s22, %s236_s22, %s237_s23  }
 0x113   :  { %233 = dma.done.wait [#allocation4], 256  }
 0x114   :  { %234 = vsyncadd [#allocation4], 4294967040 }
 0x115   :  { %134 = vsyncpa [#allocation3], 1 }
 0x116   :  { %135 = vsyncpa [#allocation6], 1 }
 0x117   :  { %136 = vsyncpa [#allocation4], 1 }

</bundles_post_ra>
